<compile_context>
chip_gen: v6e
topology: v6e:2x2x1
jax: 0.10.0
libtpu: 0.0.40
codegen_flags: <defaults>
</compile_context>

<pallas_src>
import functools

import jax
import jax.numpy as jnp
from jax.experimental import pallas as pl
from jax.experimental.pallas import tpu as pltpu


def _round_up(x: int, m: int) -> int:
    return ((x + m - 1) // m) * m


# --------------------------------- kernel ------------------------------------
def _update_u_kernel(batch_ref, u_ref, v_ref, o_ref, acc_ref, *, seg_tile):
    """Grid = (B tiles, D tiles, N tiles); N (rows of v) is the reduction axis.

    batch_ref : (1, TN)  int32   graph id of each v row in this tile (-1 = pad)
    u_ref     : (TB, TD) f32     tile of the accumulator input u
    v_ref     : (TN, TD) f32     tile of v rows
    o_ref     : (TB, TD) f32     output tile (u + segment_sum(v, batch))
    acc_ref   : (TB, TD) f32     VMEM scratch accumulator
    """
    k = pl.program_id(2)

    @pl.when(k == 0)
    def _init():
        acc_ref[...] = u_ref[...].astype(jnp.float32)

    ids = batch_ref[...]                                        # (1, TN)
    seg0 = pl.program_id(0) * seg_tile
    seg = seg0 + jax.lax.broadcasted_iota(jnp.int32, (seg_tile, ids.shape[1]), 0)
    onehot_t = (seg == ids).astype(jnp.float32)                 # (TB, TN)

    # scatter-add as a matmul on the MXU: (TB, TN) @ (TN, TD) -> (TB, TD)
    acc_ref[...] += jnp.dot(onehot_t, v_ref[...],
                            preferred_element_type=jnp.float32)

    @pl.when(k == pl.num_programs(2) - 1)
    def _finish():
        o_ref[...] = acc_ref[...].astype(o_ref.dtype)


# -------------------------------- wrapper -------------------------------------
def update_u(u, v, batch, *, tn_max=1024, tb_max=128, td_max=512):
    """Pallas equivalent of `u + scatter(v, batch, dim=0)` (segment sum)."""
    B, D = u.shape
    N = v.shape[0]

    # Tile sizes: rows of v in big tiles, D lane-dense (multiple of 128),
    # segments (B) padded to a sublane multiple.
    TB = min(_round_up(B, 8), tb_max)
    Bp = _round_up(B, TB)
    TD = min(_round_up(D, 128), td_max)
    Dp = _round_up(D, TD)
    TN = min(_round_up(N, 128), tn_max)
    Np = _round_up(N, TN)

    u_p = jnp.pad(u.astype(jnp.float32), ((0, Bp - B), (0, Dp - D)))
    v_p = jnp.pad(v.astype(jnp.float32), ((0, Np - N), (0, Dp - D)))
    b_p = jnp.pad(batch.astype(jnp.int32), (0, Np - N),
                  constant_values=-1).reshape(1, Np)

    out = pl.pallas_call(
        functools.partial(_update_u_kernel, seg_tile=TB),
        out_shape=jax.ShapeDtypeStruct((Bp, Dp), jnp.float32),
        grid=(Bp // TB, Dp // TD, Np // TN),
        in_specs=[
            pl.BlockSpec((1, TN), lambda i, j, k: (0, k)),    # batch ids
            pl.BlockSpec((TB, TD), lambda i, j, k: (i, j)),   # u tile
            pl.BlockSpec((TN, TD), lambda i, j, k: (k, j)),   # v tile
        ],
        out_specs=pl.BlockSpec((TB, TD), lambda i, j, k: (i, j)),
        scratch_shapes=[pltpu.VMEM((TB, TD), jnp.float32)],
        compiler_params=pltpu.CompilerParams(
            dimension_semantics=("parallel", "parallel", "arbitrary")),
    )(b_p, u_p, v_p)

    return out[:B, :D].astype(u.dtype)


update_u_jit = jax.jit(update_u)


# --------------------------------- main ---------------------------------------
if __name__ == "__main__":
    key = jax.random.PRNGKey(0)
    ku, kv, kb = jax.random.split(key, 3)

    B, N, D = 4, 64, 32                      # graphs, nodes, hidden dim
    u = jax.random.normal(ku, (B, D), jnp.float32)
    v = jax.random.normal(kv, (N, D), jnp.float32)
    batch = jax.random.randint(kb, (N,), 0, B, jnp.int32)

    out = update_u_jit(u, v, batch)
    jax.block_until_ready(out)

    # reference: u + segment_sum(v, batch)
    ref = u + jax.ops.segment_sum(v, batch, num_segments=B)
    assert out.shape == (B, D)
    assert bool(jnp.all(jnp.isfinite(out)))
    assert bool(jnp.allclose(out, ref, atol=1e-5, rtol=1e-5))
    print("KERNEL_OK")
</pallas_src>

<mosaic_0001>
module attributes {stable_mosaic.version = 11 : i64} {
  func.func @_update_u_kernel(%arg0: i32, %arg1: i32, %arg2: i32, %arg3: memref<1x128xi32, #tpu.memory_space<vmem>>, %arg4: memref<8x128xf32, #tpu.memory_space<vmem>>, %arg5: memref<128x128xf32, #tpu.memory_space<vmem>>, %arg6: memref<8x128xf32, #tpu.memory_space<vmem>>, %arg7: memref<8x128xf32, #tpu.memory_space<vmem>>) attributes {dimension_semantics = [#tpu.dimension_semantics<parallel>, #tpu.dimension_semantics<parallel>, #tpu.dimension_semantics<arbitrary>], iteration_bounds = array<i64: 1, 1, 1>, scalar_prefetch = 0 : i64, scratch_operands = 1 : i64, tpu.core_type = #tpu.core_type<tc>, window_params = [{transform_indices = @transform_0, window_bounds = array<i64: 1, 128>}, {transform_indices = @transform_1, window_bounds = array<i64: 8, 128>}, {transform_indices = @transform_2, window_bounds = array<i64: 128, 128>}, {transform_indices = @transform_3, window_bounds = array<i64: 8, 128>}]} {
    %c0_i32 = arith.constant 0 : i32
    %0 = arith.cmpi eq, %arg2, %c0_i32 : i32
    %1 = arith.extui %0 : i1 to i32
    %c0_i32_0 = arith.constant 0 : i32
    %2 = arith.cmpi ne, %1, %c0_i32_0 : i32
    scf.if %2 {
      %c0_10 = arith.constant 0 : index
      %c0_11 = arith.constant 0 : index
      %20 = vector.load %arg4[%c0_10, %c0_11] : memref<8x128xf32, #tpu.memory_space<vmem>>, vector<8x128xf32>
      %c0_12 = arith.constant 0 : index
      %c0_13 = arith.constant 0 : index
      %21 = vector.load %arg7[%c0_12, %c0_13] : memref<8x128xf32, #tpu.memory_space<vmem>>, vector<8x128xf32>
      tpu.vector_store %arg7[%c0_12, %c0_13], %20 {strides = array<i32>} : memref<8x128xf32, #tpu.memory_space<vmem>>, vector<8x128xf32>,
    } else {
    }
    %c0 = arith.constant 0 : index
    %c0_1 = arith.constant 0 : index
    %3 = vector.load %arg3[%c0, %c0_1] : memref<1x128xi32, #tpu.memory_space<vmem>>, vector<1x128xi32>
    %c8_i32 = arith.constant 8 : i32
    %4 = arith.muli %arg0, %c8_i32 : i32
    %5 = tpu.iota {dimensions = array<i32: 0>} : vector<8x128xi32>
    %6 = vector.broadcast %4 : i32 to vector<8x128xi32>
    %7 = arith.addi %6, %5 : vector<8x128xi32>
    %8 = vector.broadcast %3 : vector<1x128xi32> to vector<8x128xi32>
    %9 = arith.cmpi eq, %7, %8 : vector<8x128xi32>
    %10 = arith.extui %9 : vector<8x128xi1> to vector<8x128xi32>
    %11 = arith.sitofp %10 : vector<8x128xi32> to vector<8x128xf32>
    %c0_2 = arith.constant 0 : index
    %c0_3 = arith.constant 0 : index
    %12 = vector.load %arg7[%c0_2, %c0_3] : memref<8x128xf32, #tpu.memory_space<vmem>>, vector<8x128xf32>
    %c0_4 = arith.constant 0 : index
    %c0_5 = arith.constant 0 : index
    %13 = vector.load %arg5[%c0_4, %c0_5] : memref<128x128xf32, #tpu.memory_space<vmem>>, vector<128x128xf32>
    %cst = arith.constant dense<0.000000e+00> : vector<8x128xf32>
    %14 = tpu.matmul %11, %13, %cst {dimension_numbers = #tpu.dot_dimension_numbers<[1], [0], [0], [1], [0, 0, 1, 1], [], []>} : vector<8x128xf32>, vector<128x128xf32>, vector<8x128xf32> -> vector<8x128xf32>
    %15 = arith.addf %12, %14 : vector<8x128xf32>
    %c0_6 = arith.constant 0 : index
    %c0_7 = arith.constant 0 : index
    %16 = vector.load %arg7[%c0_6, %c0_7] : memref<8x128xf32, #tpu.memory_space<vmem>>, vector<8x128xf32>
    tpu.vector_store %arg7[%c0_6, %c0_7], %15 {strides = array<i32>} : memref<8x128xf32, #tpu.memory_space<vmem>>, vector<8x128xf32>,
    %c0_i32_8 = arith.constant 0 : i32
    %17 = arith.cmpi eq, %arg2, %c0_i32_8 : i32
    %18 = arith.extui %17 : i1 to i32
    %c0_i32_9 = arith.constant 0 : i32
    %19 = arith.cmpi ne, %18, %c0_i32_9 : i32
    scf.if %19 {
      %c0_10 = arith.constant 0 : index
      %c0_11 = arith.constant 0 : index
      %20 = vector.load %arg7[%c0_10, %c0_11] : memref<8x128xf32, #tpu.memory_space<vmem>>, vector<8x128xf32>
      %c0_12 = arith.constant 0 : index
      %c0_13 = arith.constant 0 : index
      %21 = vector.load %arg6[%c0_12, %c0_13] : memref<8x128xf32, #tpu.memory_space<vmem>>, vector<8x128xf32>
      tpu.vector_store %arg6[%c0_12, %c0_13], %20 {strides = array<i32>} : memref<8x128xf32, #tpu.memory_space<vmem>>, vector<8x128xf32>,
    } else {
    }
    return
  }
  func.func @transform_0(%arg0: i32, %arg1: i32, %arg2: i32) -> (i32, i32) {
    %c0_i32 = arith.constant 0 : i32
    %c0_i32_0 = arith.constant 0 : i32
    return %c0_i32, %arg2 : i32, i32
  }
  func.func @transform_1(%arg0: i32, %arg1: i32, %arg2: i32) -> (i32, i32) {
    %c0_i32 = arith.constant 0 : i32
    return %arg0, %arg1 : i32, i32
  }
  func.func @transform_2(%arg0: i32, %arg1: i32, %arg2: i32) -> (i32, i32) {
    %c0_i32 = arith.constant 0 : i32
    return %arg2, %arg1 : i32, i32
  }
  func.func @transform_3(%arg0: i32, %arg1: i32, %arg2: i32) -> (i32, i32) {
    %c0_i32 = arith.constant 0 : i32
    return %arg0, %arg1 : i32, i32
  }
}

</mosaic_0001>

<bundles_post_ra>
// kernel: update_u.1
= control target key start
LH: loop header
LB: loop body
LE: loop exit
PB: predicated region body
PF: predicated region fallthrough
CT: control target
= control target key end

     0   :  { %v189_v0 = vmov 0.0   ;;  %vm190_vm0 = vmmov 0   ;;  %v22_v13 = vlaneseq  ;;  %v191_v20 = vmov 1.0   ;;  %s269_s2 = inlined_call_operand.vmem [shape: f32[128,128], index: 2, kind: input, shape index: {}]   ;;  %s270_s0 = inlined_call_operand.vmem [shape: s32[1,128], index: 0, kind: input, shape index: {}]   ;;  %s271_s1 = inlined_call_operand.vmem [shape: f32[8,128], index: 1, kind: input, shape index: {}]   ;;  %s272_s3 = inlined_call_operand.vmem [shape: f32[8,128], index: 3, kind: output, shape index: {}]  }
   0x1   :  { %151 = vmatprep.subr.mxu0 %v189_v0  ;;  %v49_v1 = vld [vmem:[%s269_s2 + $0x78] sm:$0xff]  ;;  %v48_v2 = vld [vmem:[%s269_s2 + $0x70] sm:$0xff]  ;;  %183 = vmatprep.mubr.msk.f32.mxu0 %vm190_vm0, %v189_v0  ;;  %v47_v3 = vld [vmem:[%s269_s2 + $0x68] sm:$0xff] }
   0x2   :  { %152 = vmatpush3.msra.mxu0 %v49_v1  ;;  %v46_v4 = vld [vmem:[%s269_s2 + $0x60] sm:$0xff]  ;;  %v45_v5 = vld [vmem:[%s269_s2 + $0x58] sm:$0xff]  ;;  %v44_v6 = vld [vmem:[%s269_s2 + $0x50] sm:$0xff]  ;;  %v23_v16 = vshrl.u32 %v22_v13, 7 }
   0x3   :  { %153 = vmatprep.subr.mxu0 %v189_v0  ;;  %v43_v7 = vld [vmem:[%s269_s2 + $0x48] sm:$0xff]  ;;  %v42_v8 = vld [vmem:[%s269_s2 + $0x40] sm:$0xff]  ;;  %v41_v9 = vld [vmem:[%s269_s2 + $0x38] sm:$0xff] }
   0x4   :  { %154 = vmatpush3.msra.mxu0 %v48_v2  ;;  %v40_v10 = vld [vmem:[%s269_s2 + $0x30] sm:$0xff]  ;;  %v39_v11 = vld [vmem:[%s269_s2 + $0x28] sm:$0xff]  ;;  %v38_v12 = vld [vmem:[%s269_s2 + $0x20] sm:$0xff] }
   0x5   :  { %155 = vmatprep.subr.mxu0 %v189_v0  ;;  %v37_v14 = vld [vmem:[%s269_s2 + $0x18] sm:$0xff]  ;;  %v36_v15 = vld [vmem:[%s269_s2 + $0x10] sm:$0xff]  ;;  %v35_v17 = vld [vmem:[%s269_s2 + $0x8] sm:$0xff] }
   0x6   :  { %156 = vmatpush3.msra.mxu0 %v47_v3  ;;  %v131_v18 = vld [vmem:[%s270_s0] ss:$0 sm:$0xff] }
   0x7   :  { %157 = vmatprep.subr.mxu0 %v189_v0  ;;  %v34_v19 = vld [vmem:[%s269_s2] sm:$0xff]  ;;  %vm30_vm1 = vcmp.eq.s32.totalorder %v23_v16, %v131_v18 }
   0x8   :  { %158 = vmatpush3.msra.mxu0 %v46_v4  ;;  %v18_v21 = vld [vmem:[%s271_s1] sm:$0xff] }
   0x9   :  { %159 = vmatprep.subr.mxu0 %v189_v0 }
   0xa   :  { %160 = vmatpush3.msra.mxu0 %v45_v5 }
   0xb   :  { %161 = vmatprep.subr.mxu0 %v189_v0 }
   0xc   :  { %162 = vmatpush3.msra.mxu0 %v44_v6 }
   0xd   :  { %163 = vmatprep.subr.mxu0 %v189_v0 }
   0xe   :  { %164 = vmatpush3.msra.mxu0 %v43_v7 }
   0xf   :  { %165 = vmatprep.subr.mxu0 %v189_v0 }
  0x10   :  { %166 = vmatpush3.msra.mxu0 %v42_v8 }
  0x11   :  { %167 = vmatprep.subr.mxu0 %v189_v0 }
  0x12   :  { %168 = vmatpush3.msra.mxu0 %v41_v9 }
  0x13   :  { %169 = vmatprep.subr.mxu0 %v189_v0 }
  0x14   :  { %170 = vmatpush3.msra.mxu0 %v40_v10 }
  0x15   :  { %171 = vmatprep.subr.mxu0 %v189_v0 }
  0x16   :  { %172 = vmatpush3.msra.mxu0 %v39_v11 }
  0x17   :  { %173 = vmatprep.subr.mxu0 %v189_v0 }
  0x18   :  { %174 = vmatpush3.msra.mxu0 %v38_v12 }
  0x19   :  { %175 = vmatprep.subr.mxu0 %v189_v0 }
  0x1a   :  { %176 = vmatpush3.msra.mxu0 %v37_v14 }
  0x1b   :  { %177 = vmatprep.subr.mxu0 %v189_v0 }
  0x1c   :  { %178 = vmatpush3.msra.mxu0 %v36_v15 }
  0x1d   :  { %179 = vmatprep.subr.mxu0 %v189_v0 }
  0x1e   :  { %180 = vmatpush3.msra.mxu0 %v35_v17 }
  0x1f   :  { %181 = vmatprep.subr.mxu0 %v189_v0 }
  0x20   :  { %182 = vmatpush3.msra.mxu0 %v34_v19 }
  0x21   :  { %184 = vmatmul.mubr.msk.f32.vlgmr.msra.gmra.mxu0 %vm30_vm1, %v191_v20 }
  0xe1   :  { %v116_v22 = vpop.f32.mrf.mxu0 }
  0xe2   :  { %v120_v23 = vadd.f32 %v116_v22, %v18_v21 }
  0xe3   :  { %v185_v24 = vpop.f32.mrf.mxu0 }
  0xe4   :  { %126 = vst [vmem:[%s272_s3] sm:$0xff] %v120_v23 }

</bundles_post_ra>
